<compile_context>
chip_gen: v7x
topology: tpu7x:2x2x1
jax: 0.10.0
libtpu: 0.0.40
codegen_flags: <defaults>
</compile_context>

<pallas_src>
import functools

import jax
import jax.numpy as jnp
from jax.experimental import pallas as pl
from jax.experimental.pallas import tpu as pltpu


def _fused_moco_kernel(lhs_ref, k_ref, kjig_ref, mem1_ref, mem2_ref,
                       pos1_ref, pos2_ref, neg1_ref, neg2_ref, *, inv_t, bsz):
    """One K-tile of the fused MoCo logits.

    lhs  = [q ; q_jig]                  (2*bsz, n_dim)   resident
    mem1 = queue_1 tile                 (tile_k, n_dim)
    mem2 = queue_2 tile                 (tile_k, n_dim)
    pos1 = [<q,k> ; <q_jig,k>] / T      (2*bsz, 1)        written on step 0
    pos2 = <q, k_jig> / T               (bsz, 1)          written on step 0
    neg1 = [q ; q_jig] @ queue_1^T / T  (2*bsz, K)        tiled over K
    neg2 = q @ queue_2^T / T            (bsz, K)          tiled over K
    """
    j = pl.program_id(0)
    lhs = lhs_ref[...]

    @pl.when(j == 0)
    def _():
        # Positives: tiny rowwise dots, kept in f32 on the VPU (safe on v5e too).
        q32 = lhs[:bsz].astype(jnp.float32)
        qj32 = lhs[bsz:2 * bsz].astype(jnp.float32)
        k32 = k_ref[...].astype(jnp.float32)
        kj32 = kjig_ref[...].astype(jnp.float32)
        pos1_ref[0:bsz, :] = (
            jnp.sum(q32 * k32, axis=-1, keepdims=True) * inv_t
        ).astype(pos1_ref.dtype)
        pos1_ref[bsz:2 * bsz, :] = (
            jnp.sum(qj32 * k32, axis=-1, keepdims=True) * inv_t
        ).astype(pos1_ref.dtype)
        pos2_ref[...] = (
            jnp.sum(q32 * kj32, axis=-1, keepdims=True) * inv_t
        ).astype(pos2_ref.dtype)

    # Negatives: contract the last dim of both operands — no in-kernel .T,
    # the MXU is fed directly and the XLU/extended slot stays free.
    dn = (((1,), (1,)), ((), ()))
    neg1_ref[...] = (
        jax.lax.dot_general(lhs, mem1_ref[...], dn,
                            preferred_element_type=jnp.float32) * inv_t
    ).astype(neg1_ref.dtype)
    neg2_ref[...] = (
        jax.lax.dot_general(lhs[:bsz], mem2_ref[...], dn,
                            preferred_element_type=jnp.float32) * inv_t
    ).astype(neg2_ref.dtype)


def _pick_tile_k(K, n_dim, n_rows, bsz, itemsize=4, budget_bytes=20 << 20):
    """Largest K-tile whose double-buffered working set fits `budget_bytes`.

    Budget is sized against v7x (64 MiB physical / 32 MiB scoped VMEM); on
    v5e/v6e (128 MiB) the same choice is simply conservative.  Prefer the whole
    K (single grid step), else a 256-multiple divisor (full MXU width on
    v6e/v7x), else 128 / 8.
    """
    def step_bytes(t):
        # queue_1 + queue_2 tiles and neg_1 + neg_2 output tiles, double-buffered.
        return 2 * (2 * t * n_dim + (n_rows + bsz) * t) * itemsize

    if step_bytes(K) <= budget_bytes:
        return K
    for quantum in (256, 128, 8):
        t = (K // quantum) * quantum
        while t >= quantum:
            if K % t == 0 and step_bytes(t) <= budget_bytes:
                return t
            t -= quantum
    return K  # last resort: single step


def fused_moco_logits(q, k, k_jig, queue1, queue2, T, q_jig):
    """Fused Pallas equivalent of the three BaseMoCo._compute_logit calls.

    Returns (logits, logits2, logits_jig), each of shape [bsz, 1+K], already
    divided by T.
    """
    bsz, n_dim = q.shape
    K = queue1.shape[0]

    compute_dtype = queue1.dtype          # bf16 queues -> bf16 MXU inputs
    lhs = jnp.concatenate([q, q_jig], axis=0).astype(compute_dtype)  # (2*bsz, n_dim)
    n_rows = lhs.shape[0]

    tile_k = _pick_tile_k(K, n_dim, n_rows, bsz,
                          itemsize=jnp.dtype(compute_dtype).itemsize)
    assert K % tile_k == 0
    grid = (K // tile_k,)

    kernel = functools.partial(_fused_moco_kernel, inv_t=1.0 / T, bsz=bsz)

    pos1, pos2, neg1, neg2 = pl.pallas_call(
        kernel,
        out_shape=(
            jax.ShapeDtypeStruct((n_rows, 1), jnp.float32),
            jax.ShapeDtypeStruct((bsz, 1), jnp.float32),
            jax.ShapeDtypeStruct((n_rows, K), jnp.float32),
            jax.ShapeDtypeStruct((bsz, K), jnp.float32),
        ),
        grid_spec=pltpu.PrefetchScalarGridSpec(
            num_scalar_prefetch=0,
            grid=grid,
            in_specs=[
                pl.BlockSpec((n_rows, n_dim), lambda j: (0, 0)),   # [q ; q_jig] (resident)
                pl.BlockSpec((bsz, n_dim), lambda j: (0, 0)),      # k           (resident)
                pl.BlockSpec((bsz, n_dim), lambda j: (0, 0)),      # k_jig       (resident)
                pl.BlockSpec((tile_k, n_dim), lambda j: (j, 0)),   # queue_1 tile
                pl.BlockSpec((tile_k, n_dim), lambda j: (j, 0)),   # queue_2 tile
            ],
            out_specs=[
                pl.BlockSpec((n_rows, 1), lambda j: (0, 0)),       # pos1 (resident)
                pl.BlockSpec((bsz, 1), lambda j: (0, 0)),          # pos2 (resident)
                pl.BlockSpec((n_rows, tile_k), lambda j: (0, j)),  # neg1 tile
                pl.BlockSpec((bsz, tile_k), lambda j: (0, j)),     # neg2 tile
            ],
        ),
        compiler_params=pltpu.CompilerParams(
            # pos outputs are resident across the K axis (written on step 0 only),
            # so this axis must stay "arbitrary".  For very large K, hoist the pos
            # rowwise dots out of the kernel to mark it "parallel" (v7x megacore).
            dimension_semantics=("arbitrary",),
            vmem_limit_bytes=32 * 1024 * 1024,  # safe on v5e/v6e/v7x; >= working set
        ),
    )(lhs, k, k_jig, queue1, queue2)

    # TODO(synk): for production-sized K, write pos into a lane-padded leading block
    # of a single kernel output instead of this wrapper concat (doubles HBM writes).
    logits = jnp.concatenate([pos1[:bsz], neg1[:bsz]], axis=1)
    logits_jig = jnp.concatenate([pos1[bsz:], neg1[bsz:]], axis=1)
    logits2 = jnp.concatenate([pos2, neg2], axis=1)
    return logits, logits2, logits_jig


class RGBMoCoJigV1:
    """JAX/Pallas port of RGBMoCoJig_v1 (single-modal MoCo cache with jigsaw branch)."""

    def __init__(self, n_dim, K=512, T=0.07, seed=0, memory_dtype=jnp.float32):
        self.K = K
        self.T = T
        self.index = 0
        key = jax.random.PRNGKey(seed)
        k1, k2 = jax.random.split(key)
        m1 = jax.random.normal(k1, (K, n_dim), dtype=jnp.float32)
        m2 = jax.random.normal(k2, (K, n_dim), dtype=jnp.float32)
        # F.normalize(..., dim=1)
        m1 = m1 / jnp.maximum(jnp.linalg.norm(m1, axis=1, keepdims=True), 1e-12)
        m2 = m2 / jnp.maximum(jnp.linalg.norm(m2, axis=1, keepdims=True), 1e-12)
        # bf16 storage halves queue HBM traffic (v6e/v7x recommendation); f32 default
        # keeps the strict parity check below.
        self.memory_1 = m1.astype(memory_dtype)
        self.memory_2 = m2.astype(memory_dtype)

    def _update_pointer(self, bsz):
        self.index = (self.index + bsz) % self.K

    def _update_memory(self, k, queue):
        # (arange(bsz) + index) % K is at most two contiguous row ranges, so the
        # index_copy_ becomes dynamic_update_slice(s) instead of a full-queue scatter.
        # TODO(synk): under jit, donate the queue buffer so this is truly in-place.
        k = jax.lax.stop_gradient(k).astype(queue.dtype)
        num_neg = k.shape[0]
        idx = self.index
        if idx + num_neg <= self.K:
            return jax.lax.dynamic_update_slice(queue, k, (idx, 0))
        n_head = self.K - idx
        queue = jax.lax.dynamic_update_slice(queue, k[:n_head], (idx, 0))
        return jax.lax.dynamic_update_slice(queue, k[n_head:], (0, 0))

    def forward(self, q, k, q_jig=None, k_jig=None, all_k=None, all_k_jig=None):
        bsz = q.shape[0]
        k = jax.lax.stop_gradient(k)  # matches `k = k.detach()` in the reference
        # (the reference does NOT detach k_jig; forward values are unaffected either way)

        q_jig_eff = q_jig if q_jig is not None else q
        logits, logits2, logits_jig = fused_moco_logits(
            q, k, k_jig, self.memory_1, self.memory_2, self.T, q_jig_eff)

        labels = jnp.zeros((bsz,), dtype=jnp.int32)  # torch.long -> int32 under JAX x32

        all_k = all_k if all_k is not None else k
        all_k_jig = all_k_jig if all_k_jig is not None else k_jig
        self.memory_1 = self._update_memory(all_k, self.memory_1)
        self.memory_2 = self._update_memory(all_k_jig, self.memory_2)
        self._update_pointer(all_k.shape[0])

        if q_jig is not None:
            return logits, logits2, logits_jig, labels
        return logits, labels


if __name__ == "__main__":
    bsz, n_dim, K, T = 2, 32, 512, 0.07

    root = jax.random.PRNGKey(0)
    kq, kk, kqj, kkj = jax.random.split(root, 4)

    def l2norm(x):
        return x / jnp.maximum(jnp.linalg.norm(x, axis=1, keepdims=True), 1e-12)

    q = l2norm(jax.random.normal(kq, (bsz, n_dim), jnp.float32))
    k = l2norm(jax.random.normal(kk, (bsz, n_dim), jnp.float32))
    q_jig = l2norm(jax.random.normal(kqj, (bsz, n_dim), jnp.float32))
    k_jig = l2norm(jax.random.normal(kkj, (bsz, n_dim), jnp.float32))

    def ref_logit(qq, kk_, queue):
        pos = jnp.sum(qq * kk_, axis=-1, keepdims=True)
        neg = qq @ queue.astype(jnp.float32).T
        return jnp.concatenate([pos, neg], axis=1) / T

    # ---------- f32 queues: strict parity with the pure-JAX reference ----------
    model = RGBMoCoJigV1(n_dim=n_dim, K=K, T=T, seed=0)
    mem1_before = model.memory_1
    mem2_before = model.memory_2

    logits, logits2, logits_jig, labels = model.forward(q, k, q_jig=q_jig, k_jig=k_jig)
    jax.block_until_ready((logits, logits2, logits_jig, labels,
                           model.memory_1, model.memory_2))

    assert logits.shape == (bsz, 1 + K)
    assert logits2.shape == (bsz, 1 + K)
    assert logits_jig.shape == (bsz, 1 + K)
    assert labels.shape == (bsz,)
    assert jnp.allclose(logits, ref_logit(q, k, mem1_before), atol=1e-5)
    assert jnp.allclose(logits2, ref_logit(q, k_jig, mem2_before), atol=1e-5)
    assert jnp.allclose(logits_jig, ref_logit(q_jig, k, mem1_before), atol=1e-5)
    # memory update: contiguous write of k / k_jig at the queue pointer (index=0)
    assert jnp.allclose(model.memory_1[:bsz], k)
    assert jnp.allclose(model.memory_1[bsz:], mem1_before[bsz:])
    assert jnp.allclose(model.memory_2[:bsz], k_jig)
    assert jnp.allclose(model.memory_2[bsz:], mem2_before[bsz:])
    assert model.index == bsz

    # ---------- bf16 queues (v6e/v7x perf recommendation): loose tolerance ----------
    model_bf16 = RGBMoCoJigV1(n_dim=n_dim, K=K, T=T, seed=0, memory_dtype=jnp.bfloat16)
    m1b = model_bf16.memory_1.astype(jnp.float32)
    m2b = model_bf16.memory_2.astype(jnp.float32)
    lb, lb2, lbj, _ = model_bf16.forward(q, k, q_jig=q_jig, k_jig=k_jig)
    jax.block_until_ready((lb, lb2, lbj))
    assert float(jnp.max(jnp.abs(lb - ref_logit(q, k, m1b)))) < 0.25
    assert float(jnp.max(jnp.abs(lb2 - ref_logit(q, k_jig, m2b)))) < 0.25
    assert float(jnp.max(jnp.abs(lbj - ref_logit(q_jig, k, m1b)))) < 0.25

    print("KERNEL_OK")
</pallas_src>

<mosaic_0001>
module attributes {stable_mosaic.version = 11 : i64} {
  func.func @_fused_moco_kernel(%arg0: i32, %arg1: memref<4x32xf32, #tpu.memory_space<vmem>>, %arg2: memref<2x32xf32, #tpu.memory_space<vmem>>, %arg3: memref<2x32xf32, #tpu.memory_space<vmem>>, %arg4: memref<512x32xf32, #tpu.memory_space<vmem>>, %arg5: memref<512x32xf32, #tpu.memory_space<vmem>>, %arg6: memref<4x1xf32, #tpu.memory_space<vmem>>, %arg7: memref<2x1xf32, #tpu.memory_space<vmem>>, %arg8: memref<4x512xf32, #tpu.memory_space<vmem>>, %arg9: memref<2x512xf32, #tpu.memory_space<vmem>>) attributes {dimension_semantics = [#tpu.dimension_semantics<arbitrary>], iteration_bounds = array<i64: 1>, scalar_prefetch = 0 : i64, scratch_operands = 0 : i64, tpu.core_type = #tpu.core_type<tc>, window_params = [{pipeline_mode = #tpu.pipeline_mode<synchronous>, transform_indices = @transform_0, window_bounds = array<i64: 4, 32>}, {pipeline_mode = #tpu.pipeline_mode<synchronous>, transform_indices = @transform_1, window_bounds = array<i64: 2, 32>}, {pipeline_mode = #tpu.pipeline_mode<synchronous>, transform_indices = @transform_2, window_bounds = array<i64: 2, 32>}, {transform_indices = @transform_3, window_bounds = array<i64: 512, 32>}, {transform_indices = @transform_4, window_bounds = array<i64: 512, 32>}, {pipeline_mode = #tpu.pipeline_mode<synchronous>, transform_indices = @transform_5, window_bounds = array<i64: 4, 1>}, {pipeline_mode = #tpu.pipeline_mode<synchronous>, transform_indices = @transform_6, window_bounds = array<i64: 2, 1>}, {transform_indices = @transform_7, window_bounds = array<i64: 4, 512>}, {transform_indices = @transform_8, window_bounds = array<i64: 2, 512>}]} {
    %c0 = arith.constant 0 : index
    %c0_0 = arith.constant 0 : index
    %0 = vector.load %arg1[%c0, %c0_0] : memref<4x32xf32, #tpu.memory_space<vmem>>, vector<4x32xf32>
    %c0_i32 = arith.constant 0 : i32
    %1 = arith.cmpi eq, %arg0, %c0_i32 : i32
    %2 = arith.extui %1 : i1 to i32
    %c0_i32_1 = arith.constant 0 : i32
    %3 = arith.cmpi ne, %2, %c0_i32_1 : i32
    scf.if %3 {
      %15 = vector.extract_strided_slice %0 {offsets = [0, 0], sizes = [2, 32], strides = [1, 1]} : vector<4x32xf32> to vector<2x32xf32>
      %16 = vector.extract_strided_slice %0 {offsets = [2, 0], sizes = [2, 32], strides = [1, 1]} : vector<4x32xf32> to vector<2x32xf32>
      %c0_13 = arith.constant 0 : index
      %c0_14 = arith.constant 0 : index
      %17 = vector.load %arg2[%c0_13, %c0_14] : memref<2x32xf32, #tpu.memory_space<vmem>>, vector<2x32xf32>
      %c0_15 = arith.constant 0 : index
      %c0_16 = arith.constant 0 : index
      %18 = vector.load %arg3[%c0_15, %c0_16] : memref<2x32xf32, #tpu.memory_space<vmem>>, vector<2x32xf32>
      %19 = arith.mulf %15, %17 : vector<2x32xf32>
      %cst_17 = arith.constant dense<0.000000e+00> : vector<2xf32>
      %20 = vector.multi_reduction <add>, %19, %cst_17 [1] : vector<2x32xf32> to vector<2xf32>
      %21 = vector.shape_cast %20 : vector<2xf32> to vector<2x1xf32>
      %cst_18 = arith.constant 14.2857141 : f32
      %22 = vector.broadcast %cst_18 : f32 to vector<2x1xf32>
      %23 = arith.mulf %21, %22 : vector<2x1xf32>
      %c0_19 = arith.constant 0 : index
      %c0_20 = arith.constant 0 : index
      %24 = vector.load %arg6[%c0_19, %c0_20] : memref<4x1xf32, #tpu.memory_space<vmem>>, vector<2x1xf32>
      tpu.vector_store %arg6[%c0_19, %c0_20], %23 {strides = array<i32>} : memref<4x1xf32, #tpu.memory_space<vmem>>, vector<2x1xf32>,
      %25 = arith.mulf %16, %17 : vector<2x32xf32>
      %cst_21 = arith.constant dense<0.000000e+00> : vector<2xf32>
      %26 = vector.multi_reduction <add>, %25, %cst_21 [1] : vector<2x32xf32> to vector<2xf32>
      %27 = vector.shape_cast %26 : vector<2xf32> to vector<2x1xf32>
      %cst_22 = arith.constant 14.2857141 : f32
      %28 = vector.broadcast %cst_22 : f32 to vector<2x1xf32>
      %29 = arith.mulf %27, %28 : vector<2x1xf32>
      %c2 = arith.constant 2 : index
      %c0_23 = arith.constant 0 : index
      %30 = vector.load %arg6[%c2, %c0_23] : memref<4x1xf32, #tpu.memory_space<vmem>>, vector<2x1xf32>
      tpu.vector_store %arg6[%c2, %c0_23], %29 {strides = array<i32>} : memref<4x1xf32, #tpu.memory_space<vmem>>, vector<2x1xf32>,
      %31 = arith.mulf %15, %18 : vector<2x32xf32>
      %cst_24 = arith.constant dense<0.000000e+00> : vector<2xf32>
      %32 = vector.multi_reduction <add>, %31, %cst_24 [1] : vector<2x32xf32> to vector<2xf32>
      %33 = vector.shape_cast %32 : vector<2xf32> to vector<2x1xf32>
      %cst_25 = arith.constant 14.2857141 : f32
      %34 = vector.broadcast %cst_25 : f32 to vector<2x1xf32>
      %35 = arith.mulf %33, %34 : vector<2x1xf32>
      %c0_26 = arith.constant 0 : index
      %c0_27 = arith.constant 0 : index
      %36 = vector.load %arg7[%c0_26, %c0_27] : memref<2x1xf32, #tpu.memory_space<vmem>>, vector<2x1xf32>
      tpu.vector_store %arg7[%c0_26, %c0_27], %35 {strides = array<i32>} : memref<2x1xf32, #tpu.memory_space<vmem>>, vector<2x1xf32>,
    } else {
    }
    %c0_2 = arith.constant 0 : index
    %c0_3 = arith.constant 0 : index
    %4 = vector.load %arg4[%c0_2, %c0_3] : memref<512x32xf32, #tpu.memory_space<vmem>>, vector<512x32xf32>
    %cst = arith.constant dense<0.000000e+00> : vector<4x512xf32>
    %5 = tpu.matmul %0, %4, %cst {dimension_numbers = #tpu.dot_dimension_numbers<[1], [1], [0], [0], [0, 0, 1, 0], [], []>} : vector<4x32xf32>, vector<512x32xf32>, vector<4x512xf32> -> vector<4x512xf32>
    %cst_4 = arith.constant 14.2857141 : f32
    %6 = vector.broadcast %cst_4 : f32 to vector<4x512xf32>
    %7 = arith.mulf %5, %6 : vector<4x512xf32>
    %c0_5 = arith.constant 0 : index
    %c0_6 = arith.constant 0 : index
    %8 = vector.load %arg8[%c0_5, %c0_6] : memref<4x512xf32, #tpu.memory_space<vmem>>, vector<4x512xf32>
    tpu.vector_store %arg8[%c0_5, %c0_6], %7 {strides = array<i32>} : memref<4x512xf32, #tpu.memory_space<vmem>>, vector<4x512xf32>,
    %9 = vector.extract_strided_slice %0 {offsets = [0, 0], sizes = [2, 32], strides = [1, 1]} : vector<4x32xf32> to vector<2x32xf32>
    %c0_7 = arith.constant 0 : index
    %c0_8 = arith.constant 0 : index
    %10 = vector.load %arg5[%c0_7, %c0_8] : memref<512x32xf32, #tpu.memory_space<vmem>>, vector<512x32xf32>
    %cst_9 = arith.constant dense<0.000000e+00> : vector<2x512xf32>
    %11 = tpu.matmul %9, %10, %cst_9 {dimension_numbers = #tpu.dot_dimension_numbers<[1], [1], [0], [0], [0, 0, 1, 0], [], []>} : vector<2x32xf32>, vector<512x32xf32>, vector<2x512xf32> -> vector<2x512xf32>
    %cst_10 = arith.constant 14.2857141 : f32
    %12 = vector.broadcast %cst_10 : f32 to vector<2x512xf32>
    %13 = arith.mulf %11, %12 : vector<2x512xf32>
    %c0_11 = arith.constant 0 : index
    %c0_12 = arith.constant 0 : index
    %14 = vector.load %arg9[%c0_11, %c0_12] : memref<2x512xf32, #tpu.memory_space<vmem>>, vector<2x512xf32>
    tpu.vector_store %arg9[%c0_11, %c0_12], %13 {strides = array<i32>} : memref<2x512xf32, #tpu.memory_space<vmem>>, vector<2x512xf32>,
    return
  }
  func.func @transform_0(%arg0: i32) -> (i32, i32) {
    %c0_i32 = arith.constant 0 : i32
    %c0_i32_0 = arith.constant 0 : i32
    %c0_i32_1 = arith.constant 0 : i32
    return %c0_i32, %c0_i32_0 : i32, i32
  }
  func.func @transform_1(%arg0: i32) -> (i32, i32) {
    %c0_i32 = arith.constant 0 : i32
    %c0_i32_0 = arith.constant 0 : i32
    %c0_i32_1 = arith.constant 0 : i32
    return %c0_i32, %c0_i32_0 : i32, i32
  }
  func.func @transform_2(%arg0: i32) -> (i32, i32) {
    %c0_i32 = arith.constant 0 : i32
    %c0_i32_0 = arith.constant 0 : i32
    %c0_i32_1 = arith.constant 0 : i32
    return %c0_i32, %c0_i32_0 : i32, i32
  }
  func.func @transform_3(%arg0: i32) -> (i32, i32) {
    %c0_i32 = arith.constant 0 : i32
    %c0_i32_0 = arith.constant 0 : i32
    return %arg0, %c0_i32 : i32, i32
  }
  func.func @transform_4(%arg0: i32) -> (i32, i32) {
    %c0_i32 = arith.constant 0 : i32
    %c0_i32_0 = arith.constant 0 : i32
    return %arg0, %c0_i32 : i32, i32
  }
  func.func @transform_5(%arg0: i32) -> (i32, i32) {
    %c0_i32 = arith.constant 0 : i32
    %c0_i32_0 = arith.constant 0 : i32
    %c0_i32_1 = arith.constant 0 : i32
    return %c0_i32, %c0_i32_0 : i32, i32
  }
  func.func @transform_6(%arg0: i32) -> (i32, i32) {
    %c0_i32 = arith.constant 0 : i32
    %c0_i32_0 = arith.constant 0 : i32
    %c0_i32_1 = arith.constant 0 : i32
    return %c0_i32, %c0_i32_0 : i32, i32
  }
  func.func @transform_7(%arg0: i32) -> (i32, i32) {
    %c0_i32 = arith.constant 0 : i32
    %c0_i32_0 = arith.constant 0 : i32
    return %c0_i32, %arg0 : i32, i32
  }
  func.func @transform_8(%arg0: i32) -> (i32, i32) {
    %c0_i32 = arith.constant 0 : i32
    %c0_i32_0 = arith.constant 0 : i32
    return %c0_i32, %arg0 : i32, i32
  }
}

</mosaic_0001>

<bundles_post_ra>
// kernel: tpu_custom_call.1
= control target key start
LH: loop header
LB: loop body
LE: loop exit
PB: predicated region body
PF: predicated region fallthrough
CT: control target
= control target key end

     0   :  { %14 = vsyncpa [#allocation3], 0  ;;  %vm122_vm0 = vcmask 261120   ;;  %vm34_vm2 = vcmask 254976   ;;  %s2077_s0 = inlined_call_operand.vmem [shape: f32[4,32], index: 0, kind: input, shape index: {}]   ;;  %s2078_s1 = inlined_call_operand.vmem [shape: f32[2,32], index: 1, kind: input, shape index: {}]   ;;  %s2079_s2 = inlined_call_operand.vmem [shape: f32[2,32], index: 2, kind: input, shape index: {}]   ;;  %s2080_s3 = inlined_call_operand.vmem [shape: f32[512,32], index: 3, kind: input, shape index: {}]   ;;  %s2081_s4 = inlined_call_operand.vmem [shape: f32[512,32], index: 4, kind: input, shape index: {}]   ;;  %s2082_s5 = inlined_call_operand.vmem [shape: f32[4,1], index: 5, kind: output, shape index: {0}]   ;;  %s2083_s6 = inlined_call_operand.vmem [shape: f32[2,1], index: 6, kind: output, shape index: {1}]   ;;  %s2084_s7 = inlined_call_operand.hbm [shape: f32[4,512], index: 7, kind: output, shape index: {2}]   ;;  %s2085_s8 = inlined_call_operand.hbm [shape: f32[2,512], index: 8, kind: output, shape index: {3}]  }
   0x1   :  { %v74_v0 = vld [vmem:[%s2080_s3 + $0x80] sm:$0xff]  ;;  %v75_v1 = vld [vmem:[%s2080_s3 + $0x88] sm:$0xff]  ;;  %vm1505_vm1 = vmpackc.low %vm122_vm0, %vm122_vm0 }
   0x2   :  { %v106_v2 = vld [vmem:[%s2080_s3 + $0x180] sm:$0xff]  ;;  %v1203_v3 = vpack.c.bf16 %v75_v1, %v74_v0  ;;  %v107_v5 = vld [vmem:[%s2080_s3 + $0x188] sm:$0xff]  ;;  %v76_v13 = vld [vmem:[%s2080_s3 + $0x90] sm:$0xff] }
   0x3   :  { %v58_v6 = vld [vmem:[%s2080_s3] sm:$0xff]  ;;  %v1251_v7 = vpack.c.bf16 %v107_v5, %v106_v2  ;;  %v59_v8 = vld [vmem:[%s2080_s3 + $0x8] sm:$0xff]  ;;  %v77_v14 = vld [vmem:[%s2080_s3 + $0x98] sm:$0xff] }
   0x4   :  { %v90_v9 = vld [vmem:[%s2080_s3 + $0x100] sm:$0xff]  ;;  %v91_v10 = vld [vmem:[%s2080_s3 + $0x108] sm:$0xff]  ;;  %1205 = vmatprep.subr.msk.bf16.mxu0 %vm1505_vm1, %v1203_v3  ;;  %v1206_v11 = vpack.c.bf16 %v59_v8, %v58_v6  ;;  %v108_v15 = vld [vmem:[%s2080_s3 + $0x190] sm:$0xff]  ;;  %v1209_v16 = vpack.c.bf16 %v77_v14, %v76_v13 }
   0x5   :  { %v1254_v12 = vpack.c.bf16 %v91_v10, %v90_v9  ;;  %1253 = vmatprep.subr.msk.bf16.mxu1 %vm1505_vm1, %v1251_v7  ;;  %v109_v17 = vld [vmem:[%s2080_s3 + $0x198] sm:$0xff]  ;;  %v60_v19 = vld [vmem:[%s2080_s3 + $0x10] sm:$0xff]  ;;  %v78_v23 = vld [vmem:[%s2080_s3 + $0xa0] sm:$0xff] }
   0x6   :  { %1208 = vmatpush3.bf16.xpose.msk.msra.mxu0 %vm1505_vm1, %v1206_v11  ;;  %v1257_v18 = vpack.c.bf16 %v109_v17, %v108_v15  ;;  %v61_v20 = vld [vmem:[%s2080_s3 + $0x18] sm:$0xff]  ;;  %v92_v21 = vld [vmem:[%s2080_s3 + $0x110] sm:$0xff]  ;;  %v79_v24 = vld [vmem:[%s2080_s3 + $0xa8] sm:$0xff] }
   0x7   :  { %1256 = vmatpush3.bf16.xpose.msk.msra.mxu1 %vm1505_vm1, %v1254_v12  ;;  %1211 = vmatprep.subr.msk.bf16.mxu0 %vm1505_vm1, %v1209_v16  ;;  %v93_v22 = vld [vmem:[%s2080_s3 + $0x118] sm:$0xff]  ;;  %v110_v25 = vld [vmem:[%s2080_s3 + $0x1a0] sm:$0xff]  ;;  %v111_v26 = vld [vmem:[%s2080_s3 + $0x1a8] sm:$0xff]  ;;  %v1212_v27 = vpack.c.bf16 %v61_v20, %v60_v19  ;;  %v1215_v29 = vpack.c.bf16 %v79_v24, %v78_v23 }
   0x8   :  { %1259 = vmatprep.subr.msk.bf16.mxu1 %vm1505_vm1, %v1257_v18  ;;  %v1260_v28 = vpack.c.bf16 %v93_v22, %v92_v21  ;;  %v1263_v30 = vpack.c.bf16 %v111_v26, %v110_v25  ;;  %v62_v31 = vld [vmem:[%s2080_s3 + $0x20] sm:$0xff]  ;;  %v63_v32 = vld [vmem:[%s2080_s3 + $0x28] sm:$0xff]  ;;  %v80_v35 = vld [vmem:[%s2080_s3 + $0xb0] sm:$0xff] }
   0x9   :  { %v94_v33 = vld [vmem:[%s2080_s3 + $0x120] sm:$0xff]  ;;  %v95_v34 = vld [vmem:[%s2080_s3 + $0x128] sm:$0xff]  ;;  %v81_v36 = vld [vmem:[%s2080_s3 + $0xb8] sm:$0xff]  ;;  %v1218_v39 = vpack.c.bf16 %v63_v32, %v62_v31 }
   0xa   :  { %v112_v37 = vld [vmem:[%s2080_s3 + $0x1b0] sm:$0xff]  ;;  %v113_v38 = vld [vmem:[%s2080_s3 + $0x1b8] sm:$0xff]  ;;  %v1266_v40 = vpack.c.bf16 %v95_v34, %v94_v33  ;;  %v1221_v41 = vpack.c.bf16 %v81_v36, %v80_v35  ;;  %v1617_v45 = vld [vmem:[%s2077_s0] sm:$0xf] }
   0xb   :  { %v1269_v42 = vpack.c.bf16 %v113_v38, %v112_v37  ;;  %v64_v43 = vld [vmem:[%s2080_s3 + $0x30] sm:$0xff]  ;;  %v65_v44 = vld [vmem:[%s2080_s3 + $0x38] sm:$0xff]  ;;  %v82_v48 = vld [vmem:[%s2080_s3 + $0xc0] sm:$0xff]  ;;  %1099 = vmatprep.mubr.msk.f32.mxu0 %vm122_vm0, %v1617_v45  ;;  %1133 = vmatprep.mubr.msk.f32.mxu1 %vm122_vm0, %v1617_v45 }
   0xc   :  { %v96_v46 = vld [vmem:[%s2080_s3 + $0x130] sm:$0xff]  ;;  %v97_v47 = vld [vmem:[%s2080_s3 + $0x138] sm:$0xff]  ;;  %v83_v49 = vld [vmem:[%s2080_s3 + $0xc8] sm:$0xff]  ;;  %v1224_v52 = vpack.c.bf16 %v65_v44, %v64_v43 }
   0xd   :  { %v114_v50 = vld [vmem:[%s2080_s3 + $0x1c0] sm:$0xff]  ;;  %v115_v51 = vld [vmem:[%s2080_s3 + $0x1c8] sm:$0xff]  ;;  %v1272_v53 = vpack.c.bf16 %v97_v47, %v96_v46  ;;  %v1227_v54 = vpack.c.bf16 %v83_v49, %v82_v48  ;;  %v84_v60 = vld [vmem:[%s2080_s3 + $0xd0] sm:$0xff] }
   0xe   :  { %1214 = vmatpush3.bf16.xpose.msk.msra.mxu0 %vm1505_vm1, %v1212_v27  ;;  %v1275_v55 = vpack.c.bf16 %v115_v51, %v114_v50  ;;  %v66_v56 = vld [vmem:[%s2080_s3 + $0x40] sm:$0xff]  ;;  %v67_v57 = vld [vmem:[%s2080_s3 + $0x48] sm:$0xff]  ;;  %v85_v61 = vld [vmem:[%s2080_s3 + $0xd8] sm:$0xff] }
   0xf   :  { %1262 = vmatpush3.bf16.xpose.msk.msra.mxu1 %vm1505_vm1, %v1260_v28  ;;  %1217 = vmatprep.subr.msk.bf16.mxu0 %vm1505_vm1, %v1215_v29  ;;  %v98_v58 = vld [vmem:[%s2080_s3 + $0x140] sm:$0xff]  ;;  %v99_v59 = vld [vmem:[%s2080_s3 + $0x148] sm:$0xff]  ;;  %v116_v62 = vld [vmem:[%s2080_s3 + $0x1d0] sm:$0xff]  ;;  %v1230_v0 = vpack.c.bf16 %v67_v57, %v66_v56  ;;  %v1233_v2 = vpack.c.bf16 %v85_v61, %v84_v60 }
  0x10   :  { %1265 = vmatprep.subr.msk.bf16.mxu1 %vm1505_vm1, %v1263_v30  ;;  %v117_v63 = vld [vmem:[%s2080_s3 + $0x1d8] sm:$0xff]  ;;  %v1278_v1 = vpack.c.bf16 %v99_v59, %v98_v58  ;;  %v68_v5 = vld [vmem:[%s2080_s3 + $0x50] sm:$0xff]  ;;  %v86_v9 = vld [vmem:[%s2080_s3 + $0xe0] sm:$0xff] }
  0x11   :  { %v1281_v3 = vpack.c.bf16 %v117_v63, %v116_v62  ;;  %v69_v6 = vld [vmem:[%s2080_s3 + $0x58] sm:$0xff]  ;;  %v100_v7 = vld [vmem:[%s2080_s3 + $0x150] sm:$0xff]  ;;  %v87_v10 = vld [vmem:[%s2080_s3 + $0xe8] sm:$0xff] }
  0x12   :  { %v101_v8 = vld [vmem:[%s2080_s3 + $0x158] sm:$0xff]  ;;  %v118_v11 = vld [vmem:[%s2080_s3 + $0x1e0] sm:$0xff]  ;;  %v119_v12 = vld [vmem:[%s2080_s3 + $0x1e8] sm:$0xff]  ;;  %v1236_v13 = vpack.c.bf16 %v69_v6, %v68_v5  ;;  %v1239_v15 = vpack.c.bf16 %v87_v10, %v86_v9 }
  0x13   :  { %v1284_v14 = vpack.c.bf16 %v101_v8, %v100_v7  ;;  %v1287_v16 = vpack.c.bf16 %v119_v12, %v118_v11  ;;  %v31_v17 = vld [vmem:[%s2078_s1] sm:$0x3] }
  0x14   :  { %v32_v18 = vld [vmem:[%s2079_s2] sm:$0x3]  ;;  %v33_v19 = vmul.f32 %v31_v17, %v1617_v45  ;;  %v42_v20 = vrot.slane %v31_v17, 6 }
  0x15   :  { %v52_v21 = vmul.f32 %v32_v18, %v1617_v45 }
  0x16   :  { %1220 = vmatpush3.bf16.xpose.msk.msra.mxu0 %vm1505_vm1, %v1218_v39 }
  0x17   :  { %1268 = vmatpush3.bf16.xpose.msk.msra.mxu1 %vm1505_vm1, %v1266_v40  ;;  %1223 = vmatprep.subr.msk.bf16.mxu0 %vm1505_vm1, %v1221_v41 }
  0x18   :  { %1271 = vmatprep.subr.msk.bf16.mxu1 %vm1505_vm1, %v1269_v42 }
  0x1e   :  { %1226 = vmatpush3.bf16.xpose.msk.msra.mxu0 %vm1505_vm1, %v1224_v52 }
  0x1f   :  { %1274 = vmatpush3.bf16.xpose.msk.msra.mxu1 %vm1505_vm1, %v1272_v53  ;;  %1229 = vmatprep.subr.msk.bf16.mxu0 %vm1505_vm1, %v1227_v54 }
  0x20   :  { %1277 = vmatprep.subr.msk.bf16.mxu1 %vm1505_vm1, %v1275_v55 }
  0x26   :  { %1232 = vmatpush3.bf16.xpose.msk.msra.mxu0 %vm1505_vm1, %v1230_v0 }
  0x27   :  { %1280 = vmatpush3.bf16.xpose.msk.msra.mxu1 %vm1505_vm1, %v1278_v1  ;;  %1235 = vmatprep.subr.msk.bf16.mxu0 %vm1505_vm1, %v1233_v2 }
  0x28   :  { %1283 = vmatprep.subr.msk.bf16.mxu1 %vm1505_vm1, %v1281_v3 }
  0x29   :  { %15 = vsyncpa [#allocation5], 0  ;;  %v70_v22 = vld [vmem:[%s2080_s3 + $0x60] sm:$0xff]  ;;  %v71_v23 = vld [vmem:[%s2080_s3 + $0x68] sm:$0xff]  ;;  %vm45_vm3 = vcmask 257026   ;;  %v35_v27 = vsel %vm34_vm2, %v33_v19, 0.0  ;;  %v44_v29 = vmul.f32 %v42_v20, %v1617_v45 }
  0x2a   :  { %v102_v24 = vld [vmem:[%s2080_s3 + $0x160] sm:$0xff]  ;;  %v103_v25 = vld [vmem:[%s2080_s3 + $0x168] sm:$0xff]  ;;  %v88_v26 = vld [vmem:[%s2080_s3 + $0xf0] sm:$0xff]  ;;  %v53_v28 = vsel %vm34_vm2, %v52_v21, 0.0  ;;  %36 = vadd.xlane.f32.xlu0 %v35_v27  ;;  %v1242_v34 = vpack.c.bf16 %v71_v23, %v70_v22  ;;  %vm39_vm4 = vcmask 1024   ;;  %vm50_vm5 = vcmask 3074  }
  0x2b   :  { %v89_v30 = vld [vmem:[%s2080_s3 + $0xf8] sm:$0xff]  ;;  %v120_v31 = vld [vmem:[%s2080_s3 + $0x1f0] sm:$0xff]  ;;  %54 = vadd.xlane.f32.xlu1 %v53_v28  ;;  %v46_v33 = vsel %vm45_vm3, %v44_v29, 0.0  ;;  %v1290_v35 = vpack.c.bf16 %v103_v25, %v102_v24  ;;  %v490_v42 = vld [vmem:[%s2081_s4 + $0x80] sm:$0xff]  ;;  %s1446_s1 = smov [#allocation2]  }
  0x2c   :  { %v121_v32 = vld [vmem:[%s2080_s3 + $0x1f8] sm:$0xff]  ;;  %v1245_v36 = vpack.c.bf16 %v89_v30, %v88_v26  ;;  %v72_v38 = vld [vmem:[%s2080_s3 + $0x70] sm:$0xff]  ;;  %v491_v43 = vld [vmem:[%s2081_s4 + $0x88] sm:$0xff]  ;;  %s909_s27 = sshll.u32 %s1446_s1, 4  ;;  %s910_s27 = int_to_ptr.vmem [resolvable:$true] %s909_s27 }
  0x2d   :  { %v1293_v37 = vpack.c.bf16 %v121_v32, %v120_v31  ;;  %v73_v39 = vld [vmem:[%s2080_s3 + $0x78] sm:$0xff]  ;;  %v104_v40 = vld [vmem:[%s2080_s3 + $0x170] sm:$0xff]  ;;  %v522_v44 = vld [vmem:[%s2081_s4 + $0x180] sm:$0xff]  ;;  %v1299_v49 = vpack.c.bf16 %v491_v43, %v490_v42  ;;  %p1403_p1 = scmp.lt.s32.totalorder %s910_s27, %s910_s27 }
  0x2e   :  { %1238 = vmatpush3.bf16.xpose.msk.msra.mxu0 %vm1505_vm1, %v1236_v13  ;;  %47 = vadd.xlane.f32.xlu0 %v46_v33  ;;  %v105_v41 = vld [vmem:[%s2080_s3 + $0x178] sm:$0xff]  ;;  %v523_v46 = vld [vmem:[%s2081_s4 + $0x188] sm:$0xff]  ;;  %v1248_v47 = vpack.c.bf16 %v73_v39, %v72_v38  ;;  %v474_v51 = vld [vmem:[%s2081_s4] sm:$0xff] }
  0x2f   :  { %1286 = vmatpush3.bf16.xpose.msk.msra.mxu1 %vm1505_vm1, %v1284_v14  ;;  %1241 = vmatprep.subr.msk.bf16.mxu0 %vm1505_vm1, %v1239_v15  ;;  %v1296_v48 = vpack.c.bf16 %v105_v41, %v104_v40  ;;  %v1347_v50 = vpack.c.bf16 %v523_v46, %v522_v44  ;;  %v475_v52 = vld [vmem:[%s2081_s4 + $0x8] sm:$0xff]  ;;  %v506_v53 = vld [vmem:[%s2081_s4 + $0x100] sm:$0xff]  ;;  %v492_v55 = vld [vmem:[%s2081_s4 + $0x90] sm:$0xff] }
  0x30   :  { %1289 = vmatprep.subr.msk.bf16.mxu1 %vm1505_vm1, %v1287_v16  ;;  %v507_v54 = vld [vmem:[%s2081_s4 + $0x108] sm:$0xff]  ;;  %v493_v56 = vld [vmem:[%s2081_s4 + $0x98] sm:$0xff]  ;;  %v524_v57 = vld [vmem:[%s2081_s4 + $0x190] sm:$0xff]  ;;  %v1302_v59 = vpack.c.bf16 %v475_v52, %v474_v51 }
  0x31   :  { %v525_v58 = vld [vmem:[%s2081_s4 + $0x198] sm:$0xff]  ;;  %v1350_v60 = vpack.c.bf16 %v507_v54, %v506_v53  ;;  %v1305_v61 = vpack.c.bf16 %v493_v56, %v492_v55  ;;  %v476_v63 = vld [vmem:[%s2081_s4 + $0x10] sm:$0xff]  ;;  %v494_v3 = vld [vmem:[%s2081_s4 + $0xa0] sm:$0xff] }
  0x32   :  { %v1353_v62 = vpack.c.bf16 %v525_v58, %v524_v57  ;;  %v477_v0 = vld [vmem:[%s2081_s4 + $0x18] sm:$0xff]  ;;  %v508_v1 = vld [vmem:[%s2081_s4 + $0x110] sm:$0xff]  ;;  %v495_v5 = vld [vmem:[%s2081_s4 + $0xa8] sm:$0xff] }
  0x33   :  { %v509_v2 = vld [vmem:[%s2081_s4 + $0x118] sm:$0xff]  ;;  %v526_v6 = vld [vmem:[%s2081_s4 + $0x1a0] sm:$0xff]  ;;  %v527_v7 = vld [vmem:[%s2081_s4 + $0x1a8] sm:$0xff]  ;;  %v1308_v8 = vpack.c.bf16 %v477_v0, %v476_v63  ;;  %v1311_v10 = vpack.c.bf16 %v495_v5, %v494_v3 }
  0x34   :  { %v1356_v9 = vpack.c.bf16 %v509_v2, %v508_v1  ;;  %v1359_v11 = vpack.c.bf16 %v527_v7, %v526_v6  ;;  %v478_v12 = vld [vmem:[%s2081_s4 + $0x20] sm:$0xff]  ;;  %v479_v13 = vld [vmem:[%s2081_s4 + $0x28] sm:$0xff]  ;;  %v496_v16 = vld [vmem:[%s2081_s4 + $0xb0] sm:$0xff] }
  0x35   :  { %v510_v14 = vld [vmem:[%s2081_s4 + $0x120] sm:$0xff]  ;;  %v511_v15 = vld [vmem:[%s2081_s4 + $0x128] sm:$0xff]  ;;  %v497_v17 = vld [vmem:[%s2081_s4 + $0xb8] sm:$0xff]  ;;  %v1314_v20 = vpack.c.bf16 %v479_v13, %v478_v12 }
  0x36   :  { %1244 = vmatpush3.bf16.xpose.msk.msra.mxu0 %vm1505_vm1, %v1242_v34  ;;  %v528_v18 = vld [vmem:[%s2081_s4 + $0x1b0] sm:$0xff]  ;;  %v529_v19 = vld [vmem:[%s2081_s4 + $0x1b8] sm:$0xff]  ;;  %v1362_v21 = vpack.c.bf16 %v511_v15, %v510_v14  ;;  %v1317_v22 = vpack.c.bf16 %v497_v17, %v496_v16  ;;  %v498_v28 = vld [vmem:[%s2081_s4 + $0xc0] sm:$0xff] }
  0x37   :  { %1292 = vmatpush3.bf16.xpose.msk.msra.mxu1 %vm1505_vm1, %v1290_v35  ;;  %1247 = vmatprep.subr.msk.bf16.mxu0 %vm1505_vm1, %v1245_v36  ;;  %v1365_v23 = vpack.c.bf16 %v529_v19, %v528_v18  ;;  %v480_v24 = vld [vmem:[%s2081_s4 + $0x30] sm:$0xff]  ;;  %v481_v25 = vld [vmem:[%s2081_s4 + $0x38] sm:$0xff]  ;;  %v499_v29 = vld [vmem:[%s2081_s4 + $0xc8] sm:$0xff] }
  0x38   :  { %1295 = vmatprep.subr.msk.bf16.mxu1 %vm1505_vm1, %v1293_v37  ;;  %v512_v26 = vld [vmem:[%s2081_s4 + $0x130] sm:$0xff]  ;;  %v513_v27 = vld [vmem:[%s2081_s4 + $0x138] sm:$0xff]  ;;  %v530_v30 = vld [vmem:[%s2081_s4 + $0x1c0] sm:$0xff]  ;;  %v1320_v32 = vpack.c.bf16 %v481_v25, %v480_v24  ;;  %v1323_v34 = vpack.c.bf16 %v499_v29, %v498_v28 }
  0x39   :  { %v531_v31 = vld [vmem:[%s2081_s4 + $0x1c8] sm:$0xff]  ;;  %v1368_v33 = vpack.c.bf16 %v513_v27, %v512_v26  ;;  %v482_v36 = vld [vmem:[%s2081_s4 + $0x40] sm:$0xff]  ;;  %v500_v40 = vld [vmem:[%s2081_s4 + $0xd0] sm:$0xff] }
  0x3a   :  { %v1371_v35 = vpack.c.bf16 %v531_v31, %v530_v30  ;;  %v483_v37 = vld [vmem:[%s2081_s4 + $0x48] sm:$0xff]  ;;  %v514_v38 = vld [vmem:[%s2081_s4 + $0x140] sm:$0xff]  ;;  %v501_v41 = vld [vmem:[%s2081_s4 + $0xd8] sm:$0xff] }
  0x3b   :  { %v515_v39 = vld [vmem:[%s2081_s4 + $0x148] sm:$0xff]  ;;  %v532_v42 = vld [vmem:[%s2081_s4 + $0x1d0] sm:$0xff]  ;;  %v533_v43 = vld [vmem:[%s2081_s4 + $0x1d8] sm:$0xff]  ;;  %v1326_v44 = vpack.c.bf16 %v483_v37, %v482_v36 }
  0x3c   :  { %v1374_v46 = vpack.c.bf16 %v515_v39, %v514_v38  ;;  %v516_v51 = vld [vmem:[%s2081_s4 + $0x150] sm:$0xff]  ;;  %v517_v52 = vld [vmem:[%s2081_s4 + $0x158] sm:$0xff]  ;;  %v502_v53 = vld [vmem:[%s2081_s4 + $0xe0] sm:$0xff] }
  0x3d   :  { %v503_v54 = vld [vmem:[%s2081_s4 + $0xe8] sm:$0xff]  ;;  %v534_v55 = vld [vmem:[%s2081_s4 + $0x1e0] sm:$0xff]  ;;  %v1380_v58 = vpack.c.bf16 %v517_v52, %v516_v51  ;;  %v504_v1 = vld [vmem:[%s2081_s4 + $0xf0] sm:$0xff] }
  0x3e   :  { %1250 = vmatpush3.bf16.xpose.msk.msra.mxu0 %vm1505_vm1, %v1248_v47  ;;  %v1329_v47 = vpack.c.bf16 %v501_v41, %v500_v40  ;;  %v535_v56 = vld [vmem:[%s2081_s4 + $0x1e8] sm:$0xff]  ;;  %v518_v63 = vld [vmem:[%s2081_s4 + $0x160] sm:$0xff]  ;;  %v505_v2 = vld [vmem:[%s2081_s4 + $0xf8] sm:$0xff] }
  0x3f   :  { %1298 = vmatpush3.bf16.xpose.msk.msra.mxu1 %vm1505_vm1, %v1296_v48  ;;  %1301 = vmatprep.subr.msk.bf16.mxu0 %vm1505_vm1, %v1299_v49  ;;  %v1377_v48 = vpack.c.bf16 %v533_v43, %v532_v42  ;;  %v484_v49 = vld [vmem:[%s2081_s4 + $0x50] sm:$0xff]  ;;  %v519_v0 = vld [vmem:[%s2081_s4 + $0x168] sm:$0xff]  ;;  %v537_v5 = vld [vmem:[%s2081_s4 + $0x1f8] sm:$0xff] }
  0x40   :  { %1349 = vmatprep.subr.msk.bf16.mxu1 %vm1505_vm1, %v1347_v50  ;;  %v485_v50 = vld [vmem:[%s2081_s4 + $0x58] sm:$0xff]  ;;  %v536_v3 = vld [vmem:[%s2081_s4 + $0x1f0] sm:$0xff]  ;;  %v1386_v7 = vpack.c.bf16 %v519_v0, %v518_v63 }
  0x41   :  { %v1332_v57 = vpack.c.bf16 %v485_v50, %v484_v49  ;;  %v520_v12 = vld [vmem:[%s2081_s4 + $0x170] sm:$0xff]  ;;  %v521_v13 = vld [vmem:[%s2081_s4 + $0x178] sm:$0xff] }
  0x42   :  { %v1392_v15 = vpack.c.bf16 %v521_v13, %v520_v12 }
  0x45   :  { %1100 = vmatmul.mubr.msk.f32.vlgmr.msra.gmra.mrb[0].mxu0 %vm122_vm0, %v1617_v45 }
  0x46   :  { %1134 = vmatmul.mubr.msk.f32.vlgmr.msra.gmra.mrb[0].mxu1 %vm122_vm0, %v1617_v45  ;;  %1304 = vmatpush3.bf16.xpose.msk.msra.mxu0 %vm1505_vm1, %v1302_v59  ;;  %v1335_v59 = vpack.c.bf16 %v503_v54, %v502_v53 }
  0x47   :  { %1352 = vmatpush3.bf16.xpose.msk.msra.mxu1 %vm1505_vm1, %v1350_v60  ;;  %1307 = vmatprep.subr.msk.bf16.mxu0 %vm1505_vm1, %v1305_v61  ;;  %v1383_v60 = vpack.c.bf16 %v535_v56, %v534_v55  ;;  %v486_v61 = vld [vmem:[%s2081_s4 + $0x60] sm:$0xff] }
  0x48   :  { %1355 = vmatprep.subr.msk.bf16.mxu1 %vm1505_vm1, %v1353_v62  ;;  %1167 = vmatprep.mubr.msk.f32.mxu0 %vm122_vm0, %v1617_v45  ;;  %v487_v62 = vld [vmem:[%s2081_s4 + $0x68] sm:$0xff] }
  0x49   :  { %1201 = vmatprep.mubr.msk.f32.mxu1 %vm122_vm0, %v1617_v45  ;;  %v1338_v6 = vpack.c.bf16 %v487_v62, %v486_v61 }
  0x4e   :  { %1310 = vmatpush3.bf16.xpose.msk.msra.mxu0 %vm1505_vm1, %v1308_v8  ;;  %v1341_v8 = vpack.c.bf16 %v505_v2, %v504_v1 }
  0x4f   :  { %1358 = vmatpush3.bf16.xpose.msk.msra.mxu1 %vm1505_vm1, %v1356_v9  ;;  %1313 = vmatprep.subr.msk.bf16.mxu0 %vm1505_vm1, %v1311_v10  ;;  %v1389_v9 = vpack.c.bf16 %v537_v5, %v536_v3  ;;  %v488_v10 = vld [vmem:[%s2081_s4 + $0x70] sm:$0xff] }
  0x50   :  { %1361 = vmatprep.subr.msk.bf16.mxu1 %vm1505_vm1, %v1359_v11  ;;  %v489_v11 = vld [vmem:[%s2081_s4 + $0x78] sm:$0xff] }
  0x51   :  { %v1344_v14 = vpack.c.bf16 %v489_v11, %v488_v10 }
  0x56   :  { %1316 = vmatpush3.bf16.xpose.msk.msra.mxu0 %vm1505_vm1, %v1314_v20 }
  0x57   :  { %1364 = vmatpush3.bf16.xpose.msk.msra.mxu1 %vm1505_vm1, %v1362_v21  ;;  %1319 = vmatprep.subr.msk.bf16.mxu0 %vm1505_vm1, %v1317_v22 }
  0x58   :  { %1367 = vmatprep.subr.msk.bf16.mxu1 %vm1505_vm1, %v1365_v23 }
  0x5e   :  { %1322 = vmatpush3.bf16.xpose.msk.msra.mxu0 %vm1505_vm1, %v1320_v32 }
  0x5f   :  { %1370 = vmatpush3.bf16.xpose.msk.msra.mxu1 %vm1505_vm1, %v1368_v33  ;;  %1325 = vmatprep.subr.msk.bf16.mxu0 %vm1505_vm1, %v1323_v34 }
  0x60   :  { %1373 = vmatprep.subr.msk.bf16.mxu1 %vm1505_vm1, %v1371_v35 }
  0x66   :  { %1328 = vmatpush3.bf16.xpose.msk.msra.mxu0 %vm1505_vm1, %v1326_v44 }
  0x67   :  { %1376 = vmatpush3.bf16.xpose.msk.msra.mxu1 %vm1505_vm1, %v1374_v46  ;;  %1331 = vmatprep.subr.msk.bf16.mxu0 %vm1505_vm1, %v1329_v47 }
  0x68   :  { %1379 = vmatprep.subr.msk.bf16.mxu1 %vm1505_vm1, %v1377_v48 }
  0x6e   :  { %1334 = vmatpush3.bf16.xpose.msk.msra.mxu0 %vm1505_vm1, %v1332_v57 }
  0x6f   :  { %1382 = vmatpush3.bf16.xpose.msk.msra.mxu1 %vm1505_vm1, %v1380_v58  ;;  %1337 = vmatprep.subr.msk.bf16.mxu0 %vm1505_vm1, %v1335_v59 }
  0x70   :  { %1385 = vmatprep.subr.msk.bf16.mxu1 %vm1505_vm1, %v1383_v60 }
  0x76   :  { %1340 = vmatpush3.bf16.xpose.msk.msra.mxu0 %vm1505_vm1, %v1338_v6 }
  0x77   :  { %1388 = vmatpush3.bf16.xpose.msk.msra.mxu1 %vm1505_vm1, %v1386_v7  ;;  %1343 = vmatprep.subr.msk.bf16.mxu0 %vm1505_vm1, %v1341_v8 }
  0x78   :  { %1391 = vmatprep.subr.msk.bf16.mxu1 %vm1505_vm1, %v1389_v9 }
  0x7e   :  { %1346 = vmatpush3.bf16.xpose.msk.msra.mxu0 %vm1505_vm1, %v1344_v14 }
  0x7f   :  { %1394 = vmatpush3.bf16.xpose.msk.msra.mxu1 %vm1505_vm1, %v1392_v15 }
  0x85   :  { %1168 = vmatmul.mubr.msk.f32.vlgmr.msra.gmra.mrb[2].mxu0 %vm122_vm0, %v1617_v45 }
  0x86   :  { %1202 = vmatmul.mubr.msk.f32.vlgmr.msra.gmra.mrb[2].mxu1 %vm122_vm0, %v1617_v45 }
  0xb7   :  { %v37_v16 = vpop.xlane.xlu0 %36 }
  0xb8   :  { %v38_v17 = vmul.f32 14.285714, %v37_v16  ;;  %v55_v18 = vpop.xlane.xlu1 %54 }
  0xb9   :  { %v56_v19 = vmul.f32 14.285714, %v55_v18 }
  0xba   :  { %40 = vst.msk [vmem:[%s2082_s5] sm:$0x3] %vm39_vm4, %v38_v17 }
  0xbb   :  { %v48_v20 = vpop.xlane.xlu0 %47  ;;  %57 = vst.msk [vmem:[%s2083_s6] sm:$0x3] %vm39_vm4, %v56_v19  ;;  %s1398_s6 = scalar_lea.vmem %s910_s27, 256 }
  0xbc   :  { %v49_v4 = vmul.f32 14.285714, %v48_v20  ;;  %p1399_p0 = scmp.ne.s32.totalorder %s910_s27, %s1398_s6  ;;  %p1404_p2 = scmp.lt.s32.totalorder %s1398_s6, %s1398_s6 }
  0xbe   :  { %51 = vst.msk [vmem:[%s2082_s5] sm:$0xc] %vm50_vm5, %v49_v4  ;;  %p1405_p3 = por %p1404_p2, %p1403_p1 }
  0xc0   :  { %p1406_p4 = pnand %p1405_p3, %p1399_p0 }
 0x118   :  { %v384_v45 = vpop.f32.mrb[0].mxu0 }
 0x119   :  { %v455_v21 = vpop.f32.mrb[0].mxu1  ;;  %v460_v22 = vmul.f32 14.285714, %v384_v45  ;;  %v386_v24 = vpop.f32.mrb[1].mxu0 }
 0x11a   :  { %v462_v23 = vmul.f32 14.285714, %v455_v21  ;;  %v457_v25 = vpop.f32.mrb[1].mxu1  ;;  %v461_v26 = vmul.f32 14.285714, %v386_v24 }
 0x11b   :  { %v463_v27 = vmul.f32 14.285714, %v457_v25 }
 0x11c   :  { %v468_v28 = vcombine.low %v460_v22, %v461_v26 }
 0x11d   :  { %v469_v29 = vcombine.low %v462_v23, %v463_v27 }
 0x11e   :  { %472 = vst [vmem:[#allocation2] sm:$0xff] %v468_v28 }
 0x11f   :  { %473 = vst [vmem:[#allocation2 + $0x8] sm:$0xff] %v469_v29 }
 0x120   :  { %1409 = shalt.err (!%p1406_p4)
}
 0x121   :  { %s1410_s28 = scalar_lea.hbm %s2084_s7, 256 }
 0x122   :  { %p1411_p5 = scmp.ne.s32.totalorder %s2084_s7, %s1410_s28  ;;  %p1414_p6 = scmp.lt.u32.totalorder %s1410_s28, %s2084_s7 }
 0x124   :  { %p1416_p7 = pnand %p1414_p6, %p1411_p5 }
 0x126   :  { %1419 = shalt.err (!%p1416_p7)
}
 0x127   :  { %912 = dma.vmem_to_hbm [thread:$0]  %s910_s27, 256, %s2084_s7, [#allocation3]   ;;  %v1447_v30 = vmov 1983009808   ;;  %v885_v32 = vlaneseq }
 0x128   :  { %v883_v31 = vunpack.c.l.s4 %v1447_v30  ;;  %s1448_s11 = smov [#allocation4]  }
 0x129   :  { %v886_v34 = vshrl.u32 %v885_v32, 7  ;;  %s919_s12 = sshll.u32 %s1448_s11, 4  ;;  %s920_s12 = int_to_ptr.vmem [resolvable:$true] %s919_s12 }
 0x12a   :  { %v884_v33 = vunpack.c.0.s8 %v883_v31  ;;  %s1420_s7 = scalar_lea.vmem %s920_s12, 128  ;;  %p1425_p9 = scmp.lt.s32.totalorder %s920_s12, %s920_s12 }
 0x12b   :  { %p1421_p8 = scmp.ne.s32.totalorder %s920_s12, %s1420_s7  ;;  %p1426_p10 = scmp.lt.s32.totalorder %s1420_s7, %s1420_s7 }
 0x12c   :  { %v887_v42 = vsub.s32 %v884_v33, %v886_v34 }
 0x12d   :  { %p1427_p11 = por %p1426_p10, %p1425_p9 }
 0x12f   :  { %p1428_p12 = pnand %p1427_p11, %p1421_p8 }
 0x158   :  { %v796_v35 = vpop.f32.mrb[2].mxu0 }
 0x159   :  { %v867_v36 = vpop.f32.mrb[2].mxu1  ;;  %v872_v37 = vmul.f32 14.285714, %v796_v35  ;;  %v798_v39 = vpop.f32.mrb[3].mxu0 }
 0x15a   :  { %v874_v38 = vmul.f32 14.285714, %v867_v36  ;;  %v869_v40 = vpop.f32.mrb[3].mxu1  ;;  %v873_v41 = vmul.f32 14.285714, %v798_v39 }
 0x15b   :  { %v875_v43 = vmul.f32 14.285714, %v869_v40 }
 0x15c   :  { %v880_v44 = vcombine.low %v872_v37, %v873_v41 }
 0x15d   :  { %v881_v46 = vcombine.low %v874_v38, %v875_v43 }
 0x15e   :  { %v888_v47 = vrot.slane %v880_v44, %v887_v42 }
 0x15f   :  { %v895_v48 = vrot.slane %v881_v46, %v887_v42 }
 0x161   :  { %v896_v49 = vcombine.low %v888_v47, %v895_v48 }
 0x163   :  { %898 = vst [vmem:[#allocation4] sm:$0xff] %v896_v49 }
 0x164   :  { %1431 = shalt.err (!%p1428_p12)
}
 0x165   :  { %s1432_s15 = scalar_lea.hbm %s2085_s8, 128 }
 0x166   :  { %p1433_p13 = scmp.ne.s32.totalorder %s2085_s8, %s1432_s15  ;;  %p1436_p0 = scmp.lt.u32.totalorder %s1432_s15, %s2085_s8 }
 0x168   :  { %p1438_p1 = pnand %p1436_p0, %p1433_p13 }
 0x16a   :  { %1441 = shalt.err (!%p1438_p1)
}
 0x16b   :  { %922 = dma.vmem_to_hbm [thread:$0]  %s920_s12, 128, %s2085_s8, [#allocation5]  }
 0x16c   :  { %1442 = dma.done.wait [#allocation3], 256  }
 0x16d   :  { %1443 = vsyncadd [#allocation3], 4294967040 }
 0x16e   :  { %1444 = dma.done.wait [#allocation5], 128  }
 0x16f   :  { %1445 = vsyncadd [#allocation5], 4294967168 }
 0x170   :  { %933 = vsyncpa [#allocation3], 1 }
 0x171   :  { %934 = vsyncpa [#allocation5], 1 }

</bundles_post_ra>
